<compile_context>
chip_gen: v5e
topology: v5e:2x2
jax: 0.10.0
libtpu: 0.0.40
codegen_flags: <defaults>
</compile_context>

<pallas_src>
import random

import jax
import jax.numpy as jnp
from jax.experimental import pallas as pl
from jax.experimental.pallas import tpu as pltpu


_LANES = 128          # lane width of a vreg; last dim of the tiled slab
_MAX_BLOCK_ROWS = 512  # 512 * 128 * 4B = 256 KiB per block (f32)


def _copy_kernel(x_ref, o_ref):
    # Pure elementwise pass-through of one lane-dense tile.
    o_ref[...] = x_ref[...]


def _identity_copy(a):
    """Lane-dense, tiled, output-aliased Pallas copy of a single tensor."""
    total = a.size
    if total == 0:
        return a

    if total % _LANES == 0:
        # Flatten to a lane-dense 2D slab: (rows, 128).  This turns masked
        # partial stores (W=16 -> 16/128 lanes used) into full unmasked vst.
        rows = total // _LANES
        flat = a.reshape(rows, _LANES)
        # Block rows: either the full extent (always legal) or 512 (mult. of 8).
        block_rows = rows if rows <= _MAX_BLOCK_ROWS else _MAX_BLOCK_ROWS
        grid = (pl.cdiv(rows, block_rows),)

        out = pl.pallas_call(
            _copy_kernel,
            out_shape=jax.ShapeDtypeStruct(flat.shape, flat.dtype),
            grid=grid,
            in_specs=[pl.BlockSpec((block_rows, _LANES), lambda i: (i, 0))],
            out_specs=pl.BlockSpec((block_rows, _LANES), lambda i: (i, 0)),
            # Let XLA alias input/output buffers -> drops the extra HBM write.
            input_output_aliases={0: 0},
            compiler_params=pltpu.CompilerParams(
                dimension_semantics=("parallel",),
            ),
        )(flat)
        return out.reshape(a.shape)

    # Fallback for sizes not divisible by 128: whole-array single block
    # (last two dims equal the full extents, so the (8,128) rule is satisfied).
    return pl.pallas_call(
        _copy_kernel,
        out_shape=jax.ShapeDtypeStruct(a.shape, a.dtype),
        input_output_aliases={0: 0},
    )(a)


def _functionality(x, y):
    """Pallas implementation of RandomTransformation.functionality (identity)."""
    return _identity_copy(x), _identity_copy(y)


def random_transformation_forward(x, y, p=0.5, seed=None):
    """Pallas implementation of RandomTransformation(p).forward(x, y).

    The probabilistic gate is evaluated host-side per call (same as the
    PyTorch module's `random.random()`); `seed` makes it deterministic for
    testing.  The non-functionality branch returns the inputs untouched
    (no kernel launch, no HBM traffic).
    """
    rng = random.Random(seed) if seed is not None else random
    if rng.random() <= p:
        return _functionality(x, y)
    return (x, y)


if __name__ == "__main__":
    key = jax.random.PRNGKey(0)
    kx, ky = jax.random.split(key)

    # Small NCHW inputs consistent with the module.
    x = jax.random.normal(kx, (2, 4, 16, 16), dtype=jnp.float32)
    y = jax.random.normal(ky, (2, 4, 16, 16), dtype=jnp.float32)

    # p=1.0 -> gate always taken -> exercises the Pallas copy kernel.
    out_x, out_y = random_transformation_forward(x, y, p=1.0, seed=0)
    jax.block_until_ready((out_x, out_y))
    assert out_x.shape == x.shape and out_x.dtype == x.dtype
    assert out_y.shape == y.shape and out_y.dtype == y.dtype
    assert bool(jnp.all(out_x == x)) and bool(jnp.all(out_y == y))

    # p=0.0 -> gate (effectively) never taken -> raw pass-through, no kernel.
    px, py = random_transformation_forward(x, y, p=0.0, seed=0)
    assert bool(jnp.all(px == x)) and bool(jnp.all(py == y))

    print("KERNEL_OK")
</pallas_src>

<mosaic_0001>
module attributes {stable_mosaic.version = 11 : i64} {
  func.func @_copy_kernel(%arg0: i32, %arg1: memref<16x128xf32, #tpu.memory_space<vmem>>, %arg2: memref<16x128xf32, #tpu.memory_space<vmem>>) attributes {dimension_semantics = [#tpu.dimension_semantics<parallel>], iteration_bounds = array<i64: 1>, scalar_prefetch = 0 : i64, scratch_operands = 0 : i64, tpu.core_type = #tpu.core_type<tc>, window_params = [{transform_indices = @transform_0, window_bounds = array<i64: 16, 128>}, {transform_indices = @transform_1, window_bounds = array<i64: 16, 128>}]} {
    %c0 = arith.constant 0 : index
    %c0_0 = arith.constant 0 : index
    %0 = vector.load %arg1[%c0, %c0_0] : memref<16x128xf32, #tpu.memory_space<vmem>>, vector<16x128xf32>
    %c0_1 = arith.constant 0 : index
    %c0_2 = arith.constant 0 : index
    %1 = vector.load %arg2[%c0_1, %c0_2] : memref<16x128xf32, #tpu.memory_space<vmem>>, vector<16x128xf32>
    tpu.vector_store %arg2[%c0_1, %c0_2], %0 {strides = array<i32>} : memref<16x128xf32, #tpu.memory_space<vmem>>, vector<16x128xf32>,
    return
  }
  func.func @transform_0(%arg0: i32) -> (i32, i32) {
    %c0_i32 = arith.constant 0 : i32
    %c0_i32_0 = arith.constant 0 : i32
    return %arg0, %c0_i32 : i32, i32
  }
  func.func @transform_1(%arg0: i32) -> (i32, i32) {
    %c0_i32 = arith.constant 0 : i32
    %c0_i32_0 = arith.constant 0 : i32
    return %arg0, %c0_i32 : i32, i32
  }
}

</mosaic_0001>

<bundles_post_ra>
// kernel: tpu_custom_call.1
= control target key start
LH: loop header
LB: loop body
LE: loop exit
PB: predicated region body
PF: predicated region fallthrough
CT: control target
= control target key end

     0   :  { %6 = vsyncpa [#allocation3], 0  ;;  %s124_s0 = inlined_call_operand.hbm [shape: f32[16,128], index: 0, kind: input, shape index: {}, may-alias: {0,1}]   ;;  %s125_s1 = inlined_call_operand.hbm [shape: f32[16,128], index: 1, kind: output, shape index: {}, may-alias: {0,1}]  }
   0x1   :  { %7 = vsyncpa [#allocation4], 0  ;;  %s12_s8 = sshll.u32 %s124_s0, 4  ;;  %s104_s9 = smov [#allocation2]   ;;  %s13_s8 = int_to_ptr.hbm [resolvable:$true] %s12_s8 }
   0x2   :  { %s14_s10 = sshll.u32 %s104_s9, 4  ;;  %s105_s11 = smov 128   ;;  %s15_s10 = int_to_ptr.vmem [resolvable:$true] %s14_s10 }
   0x3   :  { %s106_s12 = smov 8  }
   0x4   :  { %20 = dma.hbm_to_vmem [thread:$0]  %s13_s8, 256, %s15_s10, [#allocation3], %s105_s11, %s105_s11, %s106_s12  }
   0x5   :  { %100 = dma.done.wait [#allocation3], 256  }
   0x6   :  { %101 = vsyncadd [#allocation3], 4294967040  ;;  %s107_s13 = smov [#allocation5]   ;;  %s35_s17 = sshll.u32 %s125_s1, 4  ;;  %v25_v0 = vld [vmem:[#allocation2] sm:$0xff]  ;;  %v26_v1 = vld [vmem:[#allocation2 + $0x8] sm:$0xff]  ;;  %s36_s17 = int_to_ptr.hbm [resolvable:$true] %s35_s17 }
   0x7   :  { %s33_s14 = sshll.u32 %s107_s13, 4  ;;  %27 = vst [vmem:[#allocation5] sm:$0xff] %v25_v0  ;;  %s34_s14 = int_to_ptr.vmem [resolvable:$true] %s33_s14 }
   0x8   :  { %28 = vst [vmem:[#allocation5 + $0x8] sm:$0xff] %v26_v1 }
   0x9   :  { %41 = dma.vmem_to_hbm [thread:$0]  %s34_s14, 256, %s36_s17, [#allocation4], %s105_s11, %s105_s11, %s106_s12  }
   0xa   :  { %102 = dma.done.wait [#allocation4], 256  }
   0xb   :  { %103 = vsyncadd [#allocation4], 4294967040 }
   0xc   :  { %46 = vsyncpa [#allocation3], 1 }
   0xd   :  { %47 = vsyncpa [#allocation4], 1 }

</bundles_post_ra>
